<compile_context>
chip_gen: v5e
topology: v5e:2x2
jax: 0.10.0
libtpu: 0.0.40
codegen_flags: <defaults>
</compile_context>

<pallas_src>
import functools

import numpy as np
import jax
import jax.numpy as jnp
from jax import lax
from jax.experimental import pallas as pl
from jax.experimental.pallas import tpu as pltpu


# ----------------------------------------------------------------------------
# Deterministic parameter setup (plain numpy glue, mirrors the torch __init__).
# ----------------------------------------------------------------------------
def hippo_LegS_matrix(N):
    # TODO(synk): hippo_LegS_matrix was not included in the source snippet;
    # using the standard (negative) HiPPO-LegS transition matrix convention.
    A = np.zeros((N, N), dtype=np.float32)
    for n in range(N):
        for k in range(N):
            if n > k:
                A[n, k] = -np.sqrt((2 * n + 1) * (2 * k + 1))
            elif n == k:
                A[n, k] = -(n + 1)
    return A


def hippo_LegS_N_matrix(N, P):
    return hippo_LegS_matrix(N) + P @ P.T


def hippo_LegS_D_matrix(N, P):
    AN = hippo_LegS_N_matrix(N, P)
    eigvals, _ = np.linalg.eig(AN)          # float32 -> complex64
    return np.diag(eigvals).astype(np.complex64)


def zoh_discretize(delta, A, B):
    # Mirrors Discretize.ZOH (elementwise exp, like the torch code).
    N = A.shape[0]
    I = np.eye(N, dtype=np.complex64)
    dA = delta * A
    idA = np.linalg.inv(dA)                  # no Pallas equivalent: host numpy
    dB = delta * B
    Ad = np.exp(dA)                          # elementwise exp (as in torch)
    Bd = idA @ (dA - I) @ dB
    return Ad, Bd


# ----------------------------------------------------------------------------
# Small helpers.
# ----------------------------------------------------------------------------
def _round_up(x, m):
    return ((x + m - 1) // m) * m


def _next_pow2(x):
    return 1 << max(0, int(x) - 1).bit_length()


# Tile-size knobs. x tile = TL*TM*4 bytes per buffer (double-buffered by the
# BlockSpec pipeline): 2048*1024*4 = 8 MiB/buffer -> 16 MiB double-buffered,
# comfortably under the 32 MiB scoped VMEM on v6e/v7x and the 64 MiB physical
# VMEM on v7x, while large enough to sit near the HBM roofline.
_TL_MAX = 2048   # L tile (power of two)
_TM_MAX = 1024   # M tile (multiple of 128 -> lane-dense output stores)


# ----------------------------------------------------------------------------
# One-time host-side parameter preparation (hoisted out of the forward path).
# ----------------------------------------------------------------------------
def make_s4d_params(A, B, C, delta):
    """ZOH-discretize and pack (Re/Im of diag(Ad), Re/Im of Bd.T*C) into a
    single (NP, 128) float32 array: column 0 = Ad.re, 1 = Ad.im, 2 = BC.re,
    3 = BC.im; rows are the N state entries (zero-padded to a multiple of 8)."""
    Ad, Bd = zoh_discretize(delta, A, B)
    BC = (Bd.T * C).reshape(-1)              # (N,) complex
    Ad_diag = np.diag(Ad)                    # (N,) complex
    N = Ad_diag.shape[0]
    NP = max(8, _round_up(N, 8))
    params = np.zeros((NP, 128), np.float32)
    params[:N, 0] = Ad_diag.real
    params[:N, 1] = Ad_diag.imag
    params[:N, 2] = BC.real
    params[:N, 3] = BC.imag
    return jnp.asarray(params)


# ----------------------------------------------------------------------------
# Pallas kernel.
# ----------------------------------------------------------------------------
def _s4d_kernel(params_ref, x_ref, o_ref, *, TL, nbits_l, nbits_k):
    k = pl.program_id(1)                     # L-tile index (reduction axis)
    NP = params_ref.shape[0]

    a_re = params_ref[:, 0:1]                # (NP, 1) Re(diag(Ad))
    a_im = params_ref[:, 1:2]                # (NP, 1) Im(diag(Ad))
    bc_re = params_ref[:, 2:3]               # (NP, 1) Re(Bd.T * C)
    bc_im = params_ref[:, 3:4]               # (NP, 1) Im(Bd.T * C)

    # w[:, l] = Ad^l for l in [0, TL): binary-exponent decomposition,
    # log2(TL) full-width VPU steps instead of a length-L serial chain.
    idx = lax.broadcasted_iota(jnp.int32, (NP, TL), 1)
    w_re = jnp.ones((NP, TL), jnp.float32)
    w_im = jnp.zeros((NP, TL), jnp.float32)
    p_re, p_im = a_re, a_im                  # Ad^(2^b)
    for b in range(nbits_l):
        bit = ((idx >> b) & 1) == 1
        mr = w_re * p_re - w_im * p_im
        mi = w_re * p_im + w_im * p_re
        w_re = jnp.where(bit, mr, w_re)
        w_im = jnp.where(bit, mi, w_im)
        p_re, p_im = p_re * p_re - p_im * p_im, 2.0 * p_re * p_im
    # p now holds Ad^TL (TL is a power of two).

    # base = Ad^(k*TL) = (Ad^TL)^k via binary exponentiation over the bits of k
    # (recomputed per grid step -> correct under megacore-parallel M tiling).
    b_re = jnp.ones((NP, 1), jnp.float32)
    b_im = jnp.zeros((NP, 1), jnp.float32)
    for b in range(nbits_k):
        bit = ((k >> b) & 1) == 1
        mr = b_re * p_re - b_im * p_im
        mi = b_re * p_im + b_im * p_re
        b_re = jnp.where(bit, mr, b_re)
        b_im = jnp.where(bit, mi, b_im)
        p_re, p_im = p_re * p_re - p_im * p_im, 2.0 * p_re * p_im

    # VAd[:, l] = Ad^(k*TL + l) for this L tile.
    vad_re = b_re * w_re - b_im * w_im
    vad_im = b_re * w_im + b_im * w_re

    # Kd row for this tile: Kd[l] = Re(sum_n BC[n] * Ad[n]^l)  -> (1, TL)
    kd = jnp.sum(bc_re * vad_re - bc_im * vad_im, axis=0, keepdims=True)

    @pl.when(k == 0)
    def _():
        o_ref[...] = jnp.zeros_like(o_ref)

    # MXU contraction with f32 accumulate: (1, TL) @ (TL, TM) -> (1, TM).
    o_ref[...] += jnp.dot(kd, x_ref[...], preferred_element_type=jnp.float32)


# ----------------------------------------------------------------------------
# Forward wrapper (jittable).
# ----------------------------------------------------------------------------
@jax.jit
def s4d_forward(params, x):
    """params: (NP, 128) packed parameters; x: (L, M) float32 -> (1, M)."""
    L, M = x.shape

    TL = min(max(_next_pow2(L), 8), _TL_MAX)        # power of two, >= 8
    TM = min(_round_up(M, 128), _TM_MAX)            # lane-dense output tile
    L_pad = _round_up(L, TL)
    M_pad = _round_up(M, TM)

    if L_pad != L or M_pad != M:
        x = jnp.pad(x, ((0, L_pad - L), (0, M_pad - M)))

    Jm, Jk = M_pad // TM, L_pad // TL
    nbits_l = TL.bit_length() - 1                    # log2(TL)
    nbits_k = max(0, (Jk - 1).bit_length())
    NP = params.shape[0]

    kernel = functools.partial(_s4d_kernel, TL=TL, nbits_l=nbits_l,
                               nbits_k=nbits_k)

    out = pl.pallas_call(
        kernel,
        out_shape=jax.ShapeDtypeStruct((1, M_pad), jnp.float32),
        grid_spec=pltpu.PrefetchScalarGridSpec(
            num_scalar_prefetch=0,
            grid=(Jm, Jk),                           # M parallel, L (reduction) last
            in_specs=[
                pl.BlockSpec((NP, 128), lambda j, k: (0, 0)),   # packed params
                pl.BlockSpec((TL, TM), lambda j, k: (k, j)),    # x tile
            ],
            out_specs=pl.BlockSpec((1, TM), lambda j, k: (0, j)),
        ),
        compiler_params=pltpu.CompilerParams(
            dimension_semantics=("parallel", "arbitrary"),
            vmem_limit_bytes=48 * 1024 * 1024),
    )(params, x)

    return out[:, :M]


# ----------------------------------------------------------------------------
# Main: deterministic params + input, run kernel, check vs numpy reference.
# ----------------------------------------------------------------------------
if __name__ == "__main__":
    N, delta = 3, 1.0
    L, M = 16, 8

    # __init__ parameters (deterministic, mirrors the torch module).
    n = np.arange(N, dtype=np.float32)
    B = np.sqrt(2.0 * n + 1.0).reshape(N, 1).astype(np.complex64)
    P = np.sqrt(n + 0.5).reshape(N, 1).astype(np.float32)
    A = hippo_LegS_D_matrix(N, P)                        # (N, N) complex64

    key = jax.random.PRNGKey(0)
    kC, kx = jax.random.split(key)
    C = np.asarray(jax.random.normal(kC, (1, N), jnp.float32)).astype(np.complex64)
    x = jax.random.normal(kx, (L, M), jnp.float32)

    params = make_s4d_params(A, B, C, delta)             # one-time host setup
    out = jax.block_until_ready(s4d_forward(params, x))

    # Pure numpy reference mirroring the torch forward.
    Ad_ref, Bd_ref = zoh_discretize(delta, A, B)
    BC_ref = Bd_ref.T * C                                # (1, N)
    VAd_ref = np.diag(Ad_ref)[:, None] ** np.arange(L)   # (N, L)
    Kd_ref = (BC_ref @ VAd_ref).real                     # (1, L)
    ref = Kd_ref @ np.asarray(x)                         # (1, M)

    np.testing.assert_allclose(np.asarray(out), ref, rtol=1e-3, atol=1e-4)
    print("KERNEL_OK")
</pallas_src>

<mosaic_0001>
module attributes {stable_mosaic.version = 11 : i64} {
  func.func @_s4d_kernel(%arg0: i32, %arg1: i32, %arg2: memref<8x128xf32, #tpu.memory_space<vmem>>, %arg3: memref<16x128xf32, #tpu.memory_space<vmem>>, %arg4: memref<1x128xf32, #tpu.memory_space<vmem>>) attributes {dimension_semantics = [#tpu.dimension_semantics<parallel>, #tpu.dimension_semantics<arbitrary>], iteration_bounds = array<i64: 1, 1>, scalar_prefetch = 0 : i64, scratch_operands = 0 : i64, tpu.core_type = #tpu.core_type<tc>, window_params = [{pipeline_mode = #tpu.pipeline_mode<synchronous>, transform_indices = @transform_0, window_bounds = array<i64: 8, 128>}, {transform_indices = @transform_1, window_bounds = array<i64: 16, 128>}, {transform_indices = @transform_2, window_bounds = array<i64: 1, 128>}]} {
    %c0 = arith.constant 0 : index
    %c0_0 = arith.constant 0 : index
    %0 = vector.load %arg2[%c0, %c0_0] : memref<8x128xf32, #tpu.memory_space<vmem>>, vector<8x1xf32>
    %c0_1 = arith.constant 0 : index
    %c1 = arith.constant 1 : index
    %1 = vector.load %arg2[%c0_1, %c1] : memref<8x128xf32, #tpu.memory_space<vmem>>, vector<8x1xf32>
    %c0_2 = arith.constant 0 : index
    %c2 = arith.constant 2 : index
    %2 = vector.load %arg2[%c0_2, %c2] : memref<8x128xf32, #tpu.memory_space<vmem>>, vector<8x1xf32>
    %c0_3 = arith.constant 0 : index
    %c3 = arith.constant 3 : index
    %3 = vector.load %arg2[%c0_3, %c3] : memref<8x128xf32, #tpu.memory_space<vmem>>, vector<8x1xf32>
    %4 = tpu.iota {dimensions = array<i32: 1>} : vector<8x16xi32>
    %cst = arith.constant 1.000000e+00 : f32
    %5 = vector.broadcast %cst : f32 to vector<8x16xf32>
    %cst_4 = arith.constant 0.000000e+00 : f32
    %6 = vector.broadcast %cst_4 : f32 to vector<8x16xf32>
    %c0_i32 = arith.constant 0 : i32
    %7 = vector.broadcast %c0_i32 : i32 to vector<8x16xi32>
    %8 = arith.shrsi %4, %7 : vector<8x16xi32>
    %c1_i32 = arith.constant 1 : i32
    %9 = vector.broadcast %c1_i32 : i32 to vector<8x16xi32>
    %10 = arith.andi %8, %9 : vector<8x16xi32>
    %c1_i32_5 = arith.constant 1 : i32
    %11 = vector.broadcast %c1_i32_5 : i32 to vector<8x16xi32>
    %12 = arith.cmpi eq, %10, %11 : vector<8x16xi32>
    %13 = vector.broadcast %0 : vector<8x1xf32> to vector<8x16xf32>
    %14 = arith.mulf %5, %13 : vector<8x16xf32>
    %15 = vector.broadcast %1 : vector<8x1xf32> to vector<8x16xf32>
    %16 = arith.mulf %6, %15 : vector<8x16xf32>
    %17 = arith.subf %14, %16 : vector<8x16xf32>
    %18 = vector.broadcast %1 : vector<8x1xf32> to vector<8x16xf32>
    %19 = arith.mulf %5, %18 : vector<8x16xf32>
    %20 = vector.broadcast %0 : vector<8x1xf32> to vector<8x16xf32>
    %21 = arith.mulf %6, %20 : vector<8x16xf32>
    %22 = arith.addf %19, %21 : vector<8x16xf32>
    %23 = arith.select %12, %17, %5 : vector<8x16xi1>, vector<8x16xf32>
    %24 = arith.select %12, %22, %6 : vector<8x16xi1>, vector<8x16xf32>
    %25 = arith.mulf %0, %0 : vector<8x1xf32>
    %26 = arith.mulf %1, %1 : vector<8x1xf32>
    %27 = arith.subf %25, %26 : vector<8x1xf32>
    %cst_6 = arith.constant 2.000000e+00 : f32
    %28 = vector.broadcast %cst_6 : f32 to vector<8x1xf32>
    %29 = arith.mulf %28, %0 : vector<8x1xf32>
    %30 = arith.mulf %29, %1 : vector<8x1xf32>
    %c1_i32_7 = arith.constant 1 : i32
    %31 = vector.broadcast %c1_i32_7 : i32 to vector<8x16xi32>
    %32 = arith.shrsi %4, %31 : vector<8x16xi32>
    %c1_i32_8 = arith.constant 1 : i32
    %33 = vector.broadcast %c1_i32_8 : i32 to vector<8x16xi32>
    %34 = arith.andi %32, %33 : vector<8x16xi32>
    %c1_i32_9 = arith.constant 1 : i32
    %35 = vector.broadcast %c1_i32_9 : i32 to vector<8x16xi32>
    %36 = arith.cmpi eq, %34, %35 : vector<8x16xi32>
    %37 = vector.broadcast %27 : vector<8x1xf32> to vector<8x16xf32>
    %38 = arith.mulf %23, %37 : vector<8x16xf32>
    %39 = vector.broadcast %30 : vector<8x1xf32> to vector<8x16xf32>
    %40 = arith.mulf %24, %39 : vector<8x16xf32>
    %41 = arith.subf %38, %40 : vector<8x16xf32>
    %42 = vector.broadcast %30 : vector<8x1xf32> to vector<8x16xf32>
    %43 = arith.mulf %23, %42 : vector<8x16xf32>
    %44 = vector.broadcast %27 : vector<8x1xf32> to vector<8x16xf32>
    %45 = arith.mulf %24, %44 : vector<8x16xf32>
    %46 = arith.addf %43, %45 : vector<8x16xf32>
    %47 = arith.select %36, %41, %23 : vector<8x16xi1>, vector<8x16xf32>
    %48 = arith.select %36, %46, %24 : vector<8x16xi1>, vector<8x16xf32>
    %49 = arith.mulf %27, %27 : vector<8x1xf32>
    %50 = arith.mulf %30, %30 : vector<8x1xf32>
    %51 = arith.subf %49, %50 : vector<8x1xf32>
    %cst_10 = arith.constant 2.000000e+00 : f32
    %52 = vector.broadcast %cst_10 : f32 to vector<8x1xf32>
    %53 = arith.mulf %52, %27 : vector<8x1xf32>
    %54 = arith.mulf %53, %30 : vector<8x1xf32>
    %c2_i32 = arith.constant 2 : i32
    %55 = vector.broadcast %c2_i32 : i32 to vector<8x16xi32>
    %56 = arith.shrsi %4, %55 : vector<8x16xi32>
    %c1_i32_11 = arith.constant 1 : i32
    %57 = vector.broadcast %c1_i32_11 : i32 to vector<8x16xi32>
    %58 = arith.andi %56, %57 : vector<8x16xi32>
    %c1_i32_12 = arith.constant 1 : i32
    %59 = vector.broadcast %c1_i32_12 : i32 to vector<8x16xi32>
    %60 = arith.cmpi eq, %58, %59 : vector<8x16xi32>
    %61 = vector.broadcast %51 : vector<8x1xf32> to vector<8x16xf32>
    %62 = arith.mulf %47, %61 : vector<8x16xf32>
    %63 = vector.broadcast %54 : vector<8x1xf32> to vector<8x16xf32>
    %64 = arith.mulf %48, %63 : vector<8x16xf32>
    %65 = arith.subf %62, %64 : vector<8x16xf32>
    %66 = vector.broadcast %54 : vector<8x1xf32> to vector<8x16xf32>
    %67 = arith.mulf %47, %66 : vector<8x16xf32>
    %68 = vector.broadcast %51 : vector<8x1xf32> to vector<8x16xf32>
    %69 = arith.mulf %48, %68 : vector<8x16xf32>
    %70 = arith.addf %67, %69 : vector<8x16xf32>
    %71 = arith.select %60, %65, %47 : vector<8x16xi1>, vector<8x16xf32>
    %72 = arith.select %60, %70, %48 : vector<8x16xi1>, vector<8x16xf32>
    %73 = arith.mulf %51, %51 : vector<8x1xf32>
    %74 = arith.mulf %54, %54 : vector<8x1xf32>
    %75 = arith.subf %73, %74 : vector<8x1xf32>
    %cst_13 = arith.constant 2.000000e+00 : f32
    %76 = vector.broadcast %cst_13 : f32 to vector<8x1xf32>
    %77 = arith.mulf %76, %51 : vector<8x1xf32>
    %78 = arith.mulf %77, %54 : vector<8x1xf32>
    %c3_i32 = arith.constant 3 : i32
    %79 = vector.broadcast %c3_i32 : i32 to vector<8x16xi32>
    %80 = arith.shrsi %4, %79 : vector<8x16xi32>
    %c1_i32_14 = arith.constant 1 : i32
    %81 = vector.broadcast %c1_i32_14 : i32 to vector<8x16xi32>
    %82 = arith.andi %80, %81 : vector<8x16xi32>
    %c1_i32_15 = arith.constant 1 : i32
    %83 = vector.broadcast %c1_i32_15 : i32 to vector<8x16xi32>
    %84 = arith.cmpi eq, %82, %83 : vector<8x16xi32>
    %85 = vector.broadcast %75 : vector<8x1xf32> to vector<8x16xf32>
    %86 = arith.mulf %71, %85 : vector<8x16xf32>
    %87 = vector.broadcast %78 : vector<8x1xf32> to vector<8x16xf32>
    %88 = arith.mulf %72, %87 : vector<8x16xf32>
    %89 = arith.subf %86, %88 : vector<8x16xf32>
    %90 = vector.broadcast %78 : vector<8x1xf32> to vector<8x16xf32>
    %91 = arith.mulf %71, %90 : vector<8x16xf32>
    %92 = vector.broadcast %75 : vector<8x1xf32> to vector<8x16xf32>
    %93 = arith.mulf %72, %92 : vector<8x16xf32>
    %94 = arith.addf %91, %93 : vector<8x16xf32>
    %95 = arith.select %84, %89, %71 : vector<8x16xi1>, vector<8x16xf32>
    %96 = arith.select %84, %94, %72 : vector<8x16xi1>, vector<8x16xf32>
    %cst_16 = arith.constant 1.000000e+00 : f32
    %97 = vector.broadcast %cst_16 : f32 to vector<8x1xf32>
    %cst_17 = arith.constant 0.000000e+00 : f32
    %98 = vector.broadcast %cst_17 : f32 to vector<8x1xf32>
    %99 = vector.broadcast %97 : vector<8x1xf32> to vector<8x16xf32>
    %100 = arith.mulf %99, %95 : vector<8x16xf32>
    %101 = vector.broadcast %98 : vector<8x1xf32> to vector<8x16xf32>
    %102 = arith.mulf %101, %96 : vector<8x16xf32>
    %103 = arith.subf %100, %102 : vector<8x16xf32>
    %104 = vector.broadcast %97 : vector<8x1xf32> to vector<8x16xf32>
    %105 = arith.mulf %104, %96 : vector<8x16xf32>
    %106 = vector.broadcast %98 : vector<8x1xf32> to vector<8x16xf32>
    %107 = arith.mulf %106, %95 : vector<8x16xf32>
    %108 = arith.addf %105, %107 : vector<8x16xf32>
    %109 = vector.broadcast %2 : vector<8x1xf32> to vector<8x16xf32>
    %110 = arith.mulf %109, %103 : vector<8x16xf32>
    %111 = vector.broadcast %3 : vector<8x1xf32> to vector<8x16xf32>
    %112 = arith.mulf %111, %108 : vector<8x16xf32>
    %113 = arith.subf %110, %112 : vector<8x16xf32>
    %cst_18 = arith.constant dense<0.000000e+00> : vector<16xf32>
    %114 = vector.multi_reduction <add>, %113, %cst_18 [0] : vector<8x16xf32> to vector<16xf32>
    %115 = vector.shape_cast %114 : vector<16xf32> to vector<1x16xf32>
    %c0_i32_19 = arith.constant 0 : i32
    %116 = arith.cmpi eq, %arg1, %c0_i32_19 : i32
    %117 = arith.extui %116 : i1 to i32
    %c0_i32_20 = arith.constant 0 : i32
    %118 = arith.cmpi ne, %117, %c0_i32_20 : i32
    scf.if %118 {
      %cst_28 = arith.constant 0.000000e+00 : f32
      %124 = vector.broadcast %cst_28 : f32 to vector<1x128xf32>
      %c0_29 = arith.constant 0 : index
      %c0_30 = arith.constant 0 : index
      %125 = vector.load %arg4[%c0_29, %c0_30] : memref<1x128xf32, #tpu.memory_space<vmem>>, vector<1x128xf32>
      tpu.vector_store %arg4[%c0_29, %c0_30], %124 {strides = array<i32>} : memref<1x128xf32, #tpu.memory_space<vmem>>, vector<1x128xf32>,
    } else {
    }
    %c0_21 = arith.constant 0 : index
    %c0_22 = arith.constant 0 : index
    %119 = vector.load %arg4[%c0_21, %c0_22] : memref<1x128xf32, #tpu.memory_space<vmem>>, vector<1x128xf32>
    %c0_23 = arith.constant 0 : index
    %c0_24 = arith.constant 0 : index
    %120 = vector.load %arg3[%c0_23, %c0_24] : memref<16x128xf32, #tpu.memory_space<vmem>>, vector<16x128xf32>
    %cst_25 = arith.constant dense<0.000000e+00> : vector<1x128xf32>
    %121 = tpu.matmul %115, %120, %cst_25 {dimension_numbers = #tpu.dot_dimension_numbers<[1], [0], [0], [1], [0, 0, 1, 1], [], []>} : vector<1x16xf32>, vector<16x128xf32>, vector<1x128xf32> -> vector<1x128xf32>
    %122 = arith.addf %119, %121 : vector<1x128xf32>
    %c0_26 = arith.constant 0 : index
    %c0_27 = arith.constant 0 : index
    %123 = vector.load %arg4[%c0_26, %c0_27] : memref<1x128xf32, #tpu.memory_space<vmem>>, vector<1x128xf32>
    tpu.vector_store %arg4[%c0_26, %c0_27], %122 {strides = array<i32>} : memref<1x128xf32, #tpu.memory_space<vmem>>, vector<1x128xf32>,
    return
  }
  func.func @transform_0(%arg0: i32, %arg1: i32) -> (i32, i32) {
    %c0_i32 = arith.constant 0 : i32
    %c0_i32_0 = arith.constant 0 : i32
    %c0_i32_1 = arith.constant 0 : i32
    return %c0_i32, %c0_i32_0 : i32, i32
  }
  func.func @transform_1(%arg0: i32, %arg1: i32) -> (i32, i32) {
    %c0_i32 = arith.constant 0 : i32
    return %arg1, %arg0 : i32, i32
  }
  func.func @transform_2(%arg0: i32, %arg1: i32) -> (i32, i32) {
    %c0_i32 = arith.constant 0 : i32
    %c0_i32_0 = arith.constant 0 : i32
    return %c0_i32, %arg0 : i32, i32
  }
}

</mosaic_0001>

<bundles_post_ra>
// kernel: s4d_forward.1
= control target key start
LH: loop header
LB: loop body
LE: loop exit
PB: predicated region body
PF: predicated region fallthrough
CT: control target
= control target key end

     0   :  { %s263_s0 = inlined_call_operand.vmem [shape: f32[8,128], index: 0, kind: input, shape index: {}]   ;;  %s264_s1 = inlined_call_operand.vmem [shape: f32[16,128], index: 1, kind: input, shape index: {}]   ;;  %s265_s2 = inlined_call_operand.hbm [shape: f32[1,128], index: 2, kind: output, shape index: {}]  }
   0x1   :  { %v12_v0 = vld [vmem:[%s263_s0] sm:$0xff] }
   0x2   :  { %7 = vsyncpa [#allocation3], 0  ;;  %v32_v1 = vmul.f32 %v12_v0, %v12_v0  ;;  %v229_v2 = vmov 0   ;;  %s230_s11 = smov 127   ;;  %v231_v3 = vmov 1   ;;  %v38_v6 = vmul.f32 2.0, %v12_v0 }
   0x3   :  { %196 = vset.pattern.permute.xlu1 %v229_v2  ;;  %198 = vset.pattern.permute.xlu2 %v229_v2  ;;  %v232_v19 = vmov 3   ;;  %v233_v20 = vmov 2   ;;  %v13_v22 = vlaneseq  ;;  %v146_v31 = vld [vmem:[%s264_s1 + $0x8] sm:$0xff]  ;;  %v145_v32 = vld [vmem:[%s264_s1] sm:$0xff]  ;;  %v234_v55 = vmov 0.0   ;;  %s235_s1 = smov [#allocation2]  }
   0x4   :  { %19 = vperm.xlu1 %196, %v12_v0   ;;  %199 = vset.pattern.permute.xlu0 %v229_v2  ;;  %143 = vst [vmem:[#allocation2] sm:$0x1] %v234_v55  ;;  %vm131_vm4 = vcmask 130048   ;;  %s177_s15 = sshll.u32 %s235_s1, 4  ;;  %s179_s18 = sshll.u32 %s265_s2, 4  ;;  %s178_s15 = int_to_ptr.vmem [resolvable:$true] %s177_s15  ;;  %s180_s18 = int_to_ptr.hbm [resolvable:$true] %s179_s18 }
   0x5   :  { %34 = vrot.lane.b32.xlu0 %v32_v1, %s230_s11  ;;  %v14_v24 = vand.u32 127, %v13_v22  ;;  %164 = vmatpush.msra.mxu0 %v146_v31 }
   0x7   :  { %v15_v28 = vand.u32 1, %v14_v24  ;;  %v43_v34 = vshra.s32 %v14_v24, 1  ;;  %165 = vmatpush.msra.mxu0 %v145_v32  ;;  %v69_v42 = vshra.s32 %v14_v24, 2  ;;  %v95_v51 = vshra.s32 %v14_v24, 3 }
   0x9   :  { %vm16_vm0 = vcmp.eq.s32.totalorder %v15_v28, 1  ;;  %v44_v39 = vand.u32 1, %v43_v34  ;;  %v70_v46 = vand.u32 1, %v69_v42  ;;  %v96_v58 = vand.u32 1, %v95_v51 }
   0xb   :  { %vm45_vm1 = vcmp.eq.s32.totalorder %v44_v39, 1  ;;  %vm71_vm2 = vcmp.eq.s32.totalorder %v70_v46, 1  ;;  %vm97_vm3 = vcmp.eq.s32.totalorder %v96_v58, 1 }
   0xc   :  { %197 = vset.pattern.permute.xlu1 %v231_v3 }
   0xd   :  { %39 = vrot.lane.b32.xlu0 %v12_v0, %s230_s11  ;;  %23 = vperm.xlu1 %197, %v12_v0  }
  0x15   :  { %200 = vset.pattern.permute.xlu1 %v229_v2 }
  0x76   :  { %v20_v21 = vpop.permute.xlu1 %19 }
  0x77   :  { %v35_v4 = vpop.permute.xlu0 %34  ;;  %v28_v26 = vmul.f32 0.0, %v20_v21 }
  0x78   :  { %v37_v5 = vsub.f32 %v32_v1, %v35_v4 }
  0x7a   :  { %48 = vperm.xlu2 %198, %v37_v5   ;;  %v67_v8 = vmul.f32 2.0, %v37_v5  ;;  %v64_v10 = vmul.f32 %v37_v5, %v37_v5 }
  0x7f   :  { %v40_v7 = vpop.permute.xlu0 %39  ;;  %v24_v25 = vpop.permute.xlu1 %23 }
  0x80   :  { %v42_v9 = vmul.f32 %v40_v7, %v38_v6  ;;  %v26_v27 = vmul.f32 0.0, %v24_v25  ;;  %v29_v30 = vadd.f32 %v28_v26, %v24_v25 }
  0x82   :  { %v65_v11 = vmul.f32 %v42_v9, %v42_v9  ;;  %54 = vperm.xlu2 %198, %v42_v9   ;;  %v68_v12 = vmul.f32 %v67_v8, %v42_v9  ;;  %v27_v29 = vsub.f32 %v20_v21, %v26_v27  ;;  %v31_v35 = vsel %vm16_vm0, %v29_v30, 0.0 }
  0x84   :  { %80 = vperm.xlu1 %200, %v68_v12   ;;  %v66_v13 = vsub.f32 %v64_v10, %v65_v11  ;;  %v91_v15 = vmul.f32 %v68_v12, %v68_v12  ;;  %v30_v36 = vsel %vm16_vm0, %v27_v29, 1.0 }
  0x86   :  { %74 = vperm.xlu0 %199, %v66_v13   ;;  %v90_v14 = vmul.f32 %v66_v13, %v66_v13  ;;  %v93_v16 = vmul.f32 2.0, %v66_v13 }
  0x88   :  { %v92_v17 = vsub.f32 %v90_v14, %v91_v15  ;;  %v94_v18 = vmul.f32 %v93_v16, %v68_v12 }
  0x8a   :  { %100 = vperm.xlu2 %198, %v92_v17  }
  0x8c   :  { %106 = vperm.xlu1 %200, %v94_v18  }
  0x8e   :  { %202 = vset.pattern.permute.xlu0 %v232_v19 }
  0x8f   :  { %126 = vperm.xlu0 %202, %v12_v0  }
  0x92   :  { %201 = vset.pattern.permute.xlu2 %v233_v20 }
  0x93   :  { %121 = vperm.xlu2 %201, %v12_v0  }
  0xd4   :  { %v49_v23 = vpop.permute.xlu2 %48 }
  0xd5   :  { %v60_v40 = vmul.f32 %v49_v23, %v31_v35  ;;  %v51_v41 = vmul.f32 %v49_v23, %v30_v36  ;;  %v144_v23 = vld [vmem:[#allocation2] sm:$0x1] }
  0xdc   :  { %v55_v33 = vpop.permute.xlu2 %54 }
  0xdd   :  { %v59_v37 = vmul.f32 %v55_v33, %v30_v36  ;;  %v57_v38 = vmul.f32 %v55_v33, %v31_v35 }
  0xdf   :  { %v61_v43 = vadd.f32 %v60_v40, %v59_v37  ;;  %v58_v44 = vsub.f32 %v51_v41, %v57_v38 }
  0xe1   :  { %v63_v47 = vsel %vm45_vm1, %v61_v43, %v31_v35  ;;  %v62_v48 = vsel %vm45_vm1, %v58_v44, %v30_v36 }
  0xe4   :  { %v101_v59 = vpop.permute.xlu2 %100 }
  0xed   :  { %v122_v10 = vpop.permute.xlu2 %121 }
  0xf6   :  { %v81_v45 = vpop.permute.xlu1 %80 }
  0xf7   :  { %v83_v49 = vmul.f32 %v81_v45, %v63_v47  ;;  %v85_v52 = vmul.f32 %v81_v45, %v62_v48 }
  0xf8   :  { %v75_v50 = vpop.permute.xlu0 %74 }
  0xf9   :  { %v77_v53 = vmul.f32 %v75_v50, %v62_v48  ;;  %v86_v54 = vmul.f32 %v75_v50, %v63_v47 }
  0xfb   :  { %v84_v56 = vsub.f32 %v77_v53, %v83_v49  ;;  %v87_v57 = vadd.f32 %v86_v54, %v85_v52 }
  0xfd   :  { %v88_v60 = vsel %vm71_vm2, %v84_v56, %v62_v48  ;;  %v89_v61 = vsel %vm71_vm2, %v87_v57, %v63_v47 }
  0xfe   :  { %v107_v62 = vpop.permute.xlu1 %106  ;;  %v103_v63 = vmul.f32 %v101_v59, %v88_v60  ;;  %v112_v0 = vmul.f32 %v101_v59, %v89_v61 }
  0xff   :  { %v109_v1 = vmul.f32 %v107_v62, %v89_v61  ;;  %v111_v2 = vmul.f32 %v107_v62, %v88_v60 }
 0x101   :  { %v110_v3 = vsub.f32 %v103_v63, %v109_v1  ;;  %v113_v4 = vadd.f32 %v112_v0, %v111_v2  ;;  %v127_v9 = vpop.permute.xlu0 %126 }
 0x103   :  { %v114_v5 = vsel %vm97_vm3, %v110_v3, %v88_v60  ;;  %v115_v6 = vsel %vm97_vm3, %v113_v4, %v89_v61 }
 0x104   :  { %v118_v7 = vmul.f32 0.0, %v114_v5  ;;  %v116_v8 = vmul.f32 0.0, %v115_v6 }
 0x106   :  { %v119_v11 = vadd.f32 %v118_v7, %v115_v6  ;;  %v117_v12 = vsub.f32 %v114_v5, %v116_v8 }
 0x108   :  { %v129_v13 = vmul.f32 %v127_v9, %v119_v11  ;;  %v124_v14 = vmul.f32 %v122_v10, %v117_v12 }
 0x10a   :  { %v130_v15 = vsub.f32 %v124_v14, %v129_v13 }
 0x10c   :  { %v132_v16 = vsel %vm131_vm4, %v130_v15, 0.0 }
 0x10d   :  { %v133_v17 = vrot.slane %v132_v16, 4 }
 0x10f   :  { %v134_v18 = vadd.f32 %v133_v17, %v132_v16 }
 0x111   :  { %v135_v19 = vrot.slane %v134_v18, 2 }
 0x113   :  { %v136_v20 = vadd.f32 %v135_v19, %v134_v18 }
 0x115   :  { %v137_v21 = vrot.slane %v136_v20, 1 }
 0x117   :  { %v138_v22 = vadd.f32 %v137_v21, %v136_v20 }
 0x119   :  { %188 = vmatmul.msk.f32.vlgmr.msra.gmra.mxu0 %vm131_vm4, %v138_v22 }
 0x196   :  { %v167_v24 = vpop.f32.mrf.mxu0 }
 0x197   :  { %v170_v25 = vadd.f32 %v167_v24, %v144_v23 }
 0x199   :  { %171 = vst [vmem:[#allocation2] sm:$0x1] %v170_v25 }
 0x19a   :  { %182 = dma.vmem_to_hbm [thread:$0]  %s178_s15, 16, %s180_s18, [#allocation3]  }
 0x19b   :  { %227 = dma.done.wait [#allocation3], 16  }
 0x19c   :  { %228 = vsyncadd [#allocation3], 4294967280 }
 0x19d   :  { %187 = vsyncpa [#allocation3], 1 }

</bundles_post_ra>
